<compile_context>
chip_gen: v6e
topology: v6e:2x2x1
jax: 0.10.0
libtpu: 0.0.40
codegen_flags: <defaults>
</compile_context>

<pallas_src>
import jax
import jax.numpy as jnp
from jax import lax
from jax.experimental import pallas as pl
from jax.experimental.pallas import tpu as pltpu

_MIB = 1024 * 1024

# Total in-kernel VMEM working budget used for tile sizing, and the explicit scoped-VMEM limit
# handed to Mosaic (kept well under 64 MiB physical on v7x, generous elsewhere).
_GEN_CFG = {
    "v7x": dict(budget=36 * _MIB, vmem_limit=48 * _MIB),
    "v6e": dict(budget=32 * _MIB, vmem_limit=64 * _MIB),
    "v5p": dict(budget=24 * _MIB, vmem_limit=64 * _MIB),
    "v5e": dict(budget=10 * _MIB, vmem_limit=32 * _MIB),
    "unknown": dict(budget=16 * _MIB, vmem_limit=48 * _MIB),
}


def _tpu_generation():
    try:
        kind = jax.devices()[0].device_kind.lower()
    except Exception:
        return "unknown"
    if "v7" in kind or "7x" in kind:
        return "v7x"
    if "v6" in kind or "6e" in kind:
        return "v6e"
    if "lite" in kind or "5e" in kind:
        return "v5e"
    if "v5" in kind:
        return "v5p"
    return "unknown"


def _pick_slab(ts, tb, H):
    """Seq rows per inner-loop iteration; bounds per-slab f32 temporaries to a few MiB."""
    target = max(32, (4 * _MIB) // max(1, tb * 4 * (H + 128)))
    if ts <= target:
        return ts
    best = None
    for d in range(32, ts, 32):          # 32 keeps slab sublane-aligned for f32/bf16/fp8
        if ts % d == 0 and d <= target:
            best = d
    return best if best is not None else ts


def _vmem_usage(tb, ts, slab, H, itemsize):
    emb_blocks = 2 * tb * ts * H * itemsize            # double-buffered emb input tiles
    mask_blocks = 2 * ts * max(tb, 8) * 4              # double-buffered f32 mask tiles
    out_blocks = 2 * tb * 3 * H * itemsize             # double-buffered output tile
    scratch = (3 * tb * H + 3 * tb) * 4                # f32 accumulators
    temps = 4 * tb * slab * (H + 128) * 4              # slab-bounded in-body f32 temporaries
    return emb_blocks + mask_blocks + out_blocks + scratch + temps


def _pick_tiles(B, S, H, itemsize, budget):
    # Batch tile: biggest 8-aligned divisor of B, but keep >= 2 batch tiles when possible so the
    # "parallel" batch axis can be split across v7x's two TensorCores.
    tb_cands = [t for t in (32, 16, 8) if B % t == 0]
    tb = None
    for t in tb_cands:
        if B // t >= 2:
            tb = t
            break
    if tb is None:
        tb = tb_cands[0] if tb_cands else B

    def fits(ts):
        return _vmem_usage(tb, ts, _pick_slab(ts, tb, H), H, itemsize) <= budget

    if fits(S):
        ts = S
    else:
        cands = [t for t in range(128, S, 128) if S % t == 0 and fits(t)]
        if cands:
            ts = max(cands)
        elif S % 128 == 0:
            ts = 128
        else:
            # TODO(synk): S has no 128-aligned divisor fitting the budget; fall back to full-S
            # tiles and rely on the explicit vmem_limit_bytes.
            ts = S
    return tb, ts, _pick_slab(ts, tb, H)


def _make_kernel(H, slab, n_slabs):
    """Fused mean/max/attention pooler over one (tb, ts, H) tile; seq grid axis is a reduction."""

    def kernel(emb_ref, mask_ref, w_ref, out_ref,
               sum_acc, cnt_acc, max_acc, m_acc, l_acc, att_acc):
        s_idx = pl.program_id(1)

        @pl.when(s_idx == 0)
        def _init():
            sum_acc[...] = jnp.zeros_like(sum_acc)
            cnt_acc[...] = jnp.zeros_like(cnt_acc)
            max_acc[...] = jnp.full_like(max_acc, -1e9)
            m_acc[...] = jnp.full_like(m_acc, -1e9)
            l_acc[...] = jnp.zeros_like(l_acc)
            att_acc[...] = jnp.zeros_like(att_acc)

        w_nat = w_ref[...]                                   # (1, H), native dtype

        def process_slab(k, off):
            # Native-dtype slab load (second-minor dynamic slice); the f32 upcast is
            # slab-bounded, never tile-bounded.
            emb_nat = emb_ref[:, pl.ds(off, slab), :]        # (tb, slab, H)
            mask = mask_ref[k]                               # (tb, slab) f32 via leading-dim index
            m3 = mask[:, :, None]                            # (tb, slab, 1)
            valid = m3 > 0.0
            emb = emb_nat.astype(jnp.float32)

            # ---- mean pooler: running masked sum + token count ----
            sum_acc[...] += jnp.sum(emb * m3, axis=1)
            cnt_acc[...] += jnp.sum(mask, axis=1, keepdims=True)

            # ---- max pooler: running max over valid tokens ----
            masked_emb = jnp.where(valid, emb, -1e9)
            max_acc[...] = jnp.maximum(max_acc[...], jnp.max(masked_emb, axis=1))

            # ---- attention pooler: score matvec on the (otherwise idle) MXU ----
            tb_, ls_, h_ = emb_nat.shape
            scores = lax.dot_general(
                emb_nat.reshape(tb_ * ls_, h_), w_nat,
                dimension_numbers=(((1,), (1,)), ((), ())),
                preferred_element_type=jnp.float32,
            ).reshape(tb_, ls_, 1)                           # (tb, slab, 1) f32
            scores = jnp.where(valid, scores, -1e9)

            chunk_max = jnp.max(scores, axis=1)              # (tb, 1)
            m_new = jnp.maximum(m_acc[...], chunk_max)
            alpha = jnp.exp(m_acc[...] - m_new)
            # Multiply by the mask so fully-masked slabs contribute exactly zero (robust
            # against the -1e9 sentinel / left padding).
            p = jnp.exp(scores - m_new[:, :, None]) * m3     # (tb, slab, 1)
            l_acc[...] = alpha * l_acc[...] + jnp.sum(p, axis=1)
            att_acc[...] = alpha * att_acc[...] + jnp.sum(p * emb, axis=1)
            m_acc[...] = m_new

        if n_slabs == 1:
            process_slab(0, 0)
        else:
            def body(k, carry):
                process_slab(k, pl.multiple_of(k * slab, slab))
                return carry
            lax.fori_loop(0, n_slabs, body, 0)

        @pl.when(s_idx == pl.num_programs(1) - 1)
        def _finalize():
            mean_pool = sum_acc[...] / jnp.maximum(cnt_acc[...], 1e-9)
            attn_pool = att_acc[...] / jnp.maximum(l_acc[...], 1e-9)
            # torch.concat([...], dim=-1): each pooler writes its own lane range.
            out_ref[:, 0:H] = mean_pool.astype(out_ref.dtype)
            out_ref[:, H:2 * H] = max_acc[...].astype(out_ref.dtype)
            out_ref[:, 2 * H:3 * H] = attn_pool.astype(out_ref.dtype)

    return kernel


def feedback_pooler(embeddings, attention_mask, attn_w, *, tb=None, ts=None, slab=None):
    """Fused FeedbackPooler forward: concat([mean, max, attn], dim=-1).

    embeddings    : [B, S, H]  (any float dtype; accumulation is f32 in-kernel)
    attention_mask: [B, S]     (1 = keep, 0 = pad)
    attn_w        : [H, 1] or [H]  attention-pooler projection weight
    returns       : [B, 1, 3H] in embeddings.dtype
    """
    B, S, H = embeddings.shape
    itemsize = jnp.dtype(embeddings.dtype).itemsize
    cfg = _GEN_CFG[_tpu_generation()]

    auto_tb, auto_ts, _ = _pick_tiles(B, S, H, itemsize, cfg["budget"])
    tb = auto_tb if tb is None else tb
    ts = auto_ts if ts is None else ts
    slab = _pick_slab(ts, tb, H) if slab is None else slab
    n_slabs = ts // slab
    assert B % tb == 0 and (tb % 8 == 0 or tb == B), (B, tb)
    assert S % ts == 0 and (ts % 128 == 0 or ts == S), (S, ts)
    assert ts % slab == 0 and (slab % 32 == 0 or slab == ts), (ts, slab)

    w_row = jnp.asarray(attn_w, embeddings.dtype).reshape(1, H)       # lane-dense weight
    mask2d = jnp.asarray(attention_mask, jnp.float32).reshape(B, S)
    # (S//slab, B, slab): per-slab mask blocks addressable with a leading-dim dynamic index
    # inside the kernel (no dynamic lane slicing).  HBM traffic is unchanged (B*S*4 bytes).
    mask_slabs = mask2d.reshape(B, S // slab, slab).transpose(1, 0, 2)

    cost = pl.CostEstimate(
        flops=8 * B * S * H,
        transcendentals=B * S,
        bytes_accessed=B * S * H * itemsize + B * S * 4 + B * 3 * H * itemsize,
    )

    out2d = pl.pallas_call(
        _make_kernel(H, slab, n_slabs),
        out_shape=jax.ShapeDtypeStruct((B, 3 * H), embeddings.dtype),
        grid_spec=pltpu.PrefetchScalarGridSpec(
            num_scalar_prefetch=0,
            grid=(B // tb, S // ts),                          # seq (reduction) axis last
            in_specs=[
                pl.BlockSpec((tb, ts, H), lambda i, j: (i, j, 0)),
                pl.BlockSpec((ts // slab, tb, slab), lambda i, j: (j, i, 0)),
                pl.BlockSpec((1, H), lambda i, j: (0, 0)),
            ],
            out_specs=pl.BlockSpec((tb, 3 * H), lambda i, j: (i, 0)),
            scratch_shapes=[
                pltpu.VMEM((tb, H), jnp.float32),   # sum_acc
                pltpu.VMEM((tb, 1), jnp.float32),   # cnt_acc
                pltpu.VMEM((tb, H), jnp.float32),   # max_acc
                pltpu.VMEM((tb, 1), jnp.float32),   # m_acc   (online-softmax max)
                pltpu.VMEM((tb, 1), jnp.float32),   # l_acc   (online-softmax denom)
                pltpu.VMEM((tb, H), jnp.float32),   # att_acc (online-softmax numer)
            ],
        ),
        compiler_params=pltpu.CompilerParams(
            dimension_semantics=("parallel", "arbitrary"),
            vmem_limit_bytes=cfg["vmem_limit"],
        ),
        cost_estimate=cost,
    )(embeddings, mask_slabs, w_row)

    # Matches the reference: 2-D pooler outputs get unsqueeze(1) -> [B, 1, 3H].
    return out2d[:, None, :]


def _reference(embeddings, attention_mask, attn_w):
    """Pure-JAX reference mirroring the three poolers + concat (all f32)."""
    emb = embeddings.astype(jnp.float32)
    m = attention_mask[..., None].astype(jnp.float32)                  # (B, S, 1)
    w = jnp.asarray(attn_w, jnp.float32).reshape(emb.shape[-1], 1)
    mean = jnp.sum(emb * m, axis=1) / jnp.maximum(jnp.sum(m, axis=1), 1e-9)
    mx = jnp.max(jnp.where(m > 0, emb, -1e9), axis=1)
    s = jnp.einsum("bsh,ho->bso", emb, w)
    s = jnp.where(m > 0, s, -1e9)
    p = jax.nn.softmax(s, axis=1)
    attn = jnp.sum(p * emb, axis=1)
    return jnp.concatenate([mean, mx, attn], axis=-1)[:, None, :]      # (B, 1, 3H)


if __name__ == "__main__":
    key = jax.random.PRNGKey(0)
    k_emb, k_w, k_rest = jax.random.split(key, 3)

    # ---- test 1: small f32 case, single tile / single slab ----
    B, S, H = 2, 8, 32
    embeddings = jax.random.normal(k_emb, (B, S, H), dtype=jnp.float32)
    attention_mask = jnp.array(
        [[1, 1, 1, 1, 1, 1, 0, 0],
         [1, 1, 1, 1, 1, 1, 1, 1]], dtype=jnp.float32)
    attn_w = jax.random.normal(k_w, (H, 1), dtype=jnp.float32) * 0.1

    out = jax.block_until_ready(feedback_pooler(embeddings, attention_mask, attn_w))
    ref = _reference(embeddings, attention_mask, attn_w)
    assert out.shape == (B, 1, 3 * H), out.shape
    assert jnp.allclose(out, ref, atol=1e-4, rtol=1e-4), "f32 mismatch vs reference"

    # ---- test 2: bf16 inputs, 2 batch tiles x 2 seq grid steps x 2 inner slabs ----
    B2, S2, H2 = 16, 256, 128
    k_e2, k_w2, k_len = jax.random.split(k_rest, 3)
    emb2 = jax.random.normal(k_e2, (B2, S2, H2), dtype=jnp.float32).astype(jnp.bfloat16)
    lengths = jax.random.randint(k_len, (B2,), 1, S2 + 1)
    mask2 = (jnp.arange(S2)[None, :] < lengths[:, None]).astype(jnp.float32)
    w2 = (jax.random.normal(k_w2, (H2, 1), dtype=jnp.float32) * 0.1).astype(jnp.bfloat16)

    out2 = jax.block_until_ready(feedback_pooler(emb2, mask2, w2, ts=128, slab=64))
    ref2 = _reference(emb2.astype(jnp.float32), mask2, w2.astype(jnp.float32))
    assert out2.shape == (B2, 1, 3 * H2), out2.shape
    assert jnp.allclose(out2.astype(jnp.float32), ref2, atol=2e-2, rtol=2e-2), \
        "bf16 mismatch vs reference"

    print("KERNEL_OK")
</pallas_src>

<mosaic_0001>
module attributes {stable_mosaic.version = 11 : i64} {
  func.func @kernel(%arg0: i32, %arg1: i32, %arg2: memref<2x8x32xf32, #tpu.memory_space<vmem>>, %arg3: memref<1x2x8xf32, #tpu.memory_space<vmem>>, %arg4: memref<1x32xf32, #tpu.memory_space<vmem>>, %arg5: memref<2x96xf32, #tpu.memory_space<vmem>>, %arg6: memref<2x32xf32, #tpu.memory_space<vmem>>, %arg7: memref<2x1xf32, #tpu.memory_space<vmem>>, %arg8: memref<2x32xf32, #tpu.memory_space<vmem>>, %arg9: memref<2x1xf32, #tpu.memory_space<vmem>>, %arg10: memref<2x1xf32, #tpu.memory_space<vmem>>, %arg11: memref<2x32xf32, #tpu.memory_space<vmem>>) attributes {dimension_semantics = [#tpu.dimension_semantics<parallel>, #tpu.dimension_semantics<arbitrary>], iteration_bounds = array<i64: 1, 1>, scalar_prefetch = 0 : i64, scratch_operands = 6 : i64, tpu.core_type = #tpu.core_type<tc>, window_params = [{transform_indices = @transform_0, window_bounds = array<i64: 2, 8, 32>}, {transform_indices = @transform_1, window_bounds = array<i64: 1, 2, 8>}, {pipeline_mode = #tpu.pipeline_mode<synchronous>, transform_indices = @transform_2, window_bounds = array<i64: 1, 32>}, {transform_indices = @transform_3, window_bounds = array<i64: 2, 96>}]} {
    %c0_i32 = arith.constant 0 : i32
    %0 = arith.cmpi eq, %arg1, %c0_i32 : i32
    %1 = arith.extui %0 : i1 to i32
    %c0_i32_0 = arith.constant 0 : i32
    %2 = arith.cmpi ne, %1, %c0_i32_0 : i32
    scf.if %2 {
      %cst_45 = arith.constant 0.000000e+00 : f32
      %62 = vector.broadcast %cst_45 : f32 to vector<2x32xf32>
      %c0_46 = arith.constant 0 : index
      %c0_47 = arith.constant 0 : index
      %63 = vector.load %arg6[%c0_46, %c0_47] : memref<2x32xf32, #tpu.memory_space<vmem>>, vector<2x32xf32>
      tpu.vector_store %arg6[%c0_46, %c0_47], %62 {strides = array<i32>} : memref<2x32xf32, #tpu.memory_space<vmem>>, vector<2x32xf32>,
      %cst_48 = arith.constant 0.000000e+00 : f32
      %64 = vector.broadcast %cst_48 : f32 to vector<2x1xf32>
      %c0_49 = arith.constant 0 : index
      %c0_50 = arith.constant 0 : index
      %65 = vector.load %arg7[%c0_49, %c0_50] : memref<2x1xf32, #tpu.memory_space<vmem>>, vector<2x1xf32>
      tpu.vector_store %arg7[%c0_49, %c0_50], %64 {strides = array<i32>} : memref<2x1xf32, #tpu.memory_space<vmem>>, vector<2x1xf32>,
      %cst_51 = arith.constant -1.000000e+09 : f32
      %66 = vector.broadcast %cst_51 : f32 to vector<2x32xf32>
      %c0_52 = arith.constant 0 : index
      %c0_53 = arith.constant 0 : index
      %67 = vector.load %arg8[%c0_52, %c0_53] : memref<2x32xf32, #tpu.memory_space<vmem>>, vector<2x32xf32>
      tpu.vector_store %arg8[%c0_52, %c0_53], %66 {strides = array<i32>} : memref<2x32xf32, #tpu.memory_space<vmem>>, vector<2x32xf32>,
      %cst_54 = arith.constant -1.000000e+09 : f32
      %68 = vector.broadcast %cst_54 : f32 to vector<2x1xf32>
      %c0_55 = arith.constant 0 : index
      %c0_56 = arith.constant 0 : index
      %69 = vector.load %arg9[%c0_55, %c0_56] : memref<2x1xf32, #tpu.memory_space<vmem>>, vector<2x1xf32>
      tpu.vector_store %arg9[%c0_55, %c0_56], %68 {strides = array<i32>} : memref<2x1xf32, #tpu.memory_space<vmem>>, vector<2x1xf32>,
      %cst_57 = arith.constant 0.000000e+00 : f32
      %70 = vector.broadcast %cst_57 : f32 to vector<2x1xf32>
      %c0_58 = arith.constant 0 : index
      %c0_59 = arith.constant 0 : index
      %71 = vector.load %arg10[%c0_58, %c0_59] : memref<2x1xf32, #tpu.memory_space<vmem>>, vector<2x1xf32>
      tpu.vector_store %arg10[%c0_58, %c0_59], %70 {strides = array<i32>} : memref<2x1xf32, #tpu.memory_space<vmem>>, vector<2x1xf32>,
      %cst_60 = arith.constant 0.000000e+00 : f32
      %72 = vector.broadcast %cst_60 : f32 to vector<2x32xf32>
      %c0_61 = arith.constant 0 : index
      %c0_62 = arith.constant 0 : index
      %73 = vector.load %arg11[%c0_61, %c0_62] : memref<2x32xf32, #tpu.memory_space<vmem>>, vector<2x32xf32>
      tpu.vector_store %arg11[%c0_61, %c0_62], %72 {strides = array<i32>} : memref<2x32xf32, #tpu.memory_space<vmem>>, vector<2x32xf32>,
    } else {
    }
    %c0 = arith.constant 0 : index
    %c0_1 = arith.constant 0 : index
    %3 = vector.load %arg4[%c0, %c0_1] : memref<1x32xf32, #tpu.memory_space<vmem>>, vector<1x32xf32>
    %c0_2 = arith.constant 0 : index
    %c0_3 = arith.constant 0 : index
    %c0_4 = arith.constant 0 : index
    %4 = vector.load %arg2[%c0_2, %c0_3, %c0_4] : memref<2x8x32xf32, #tpu.memory_space<vmem>>, vector<2x8x32xf32>
    %c0_5 = arith.constant 0 : index
    %c0_6 = arith.constant 0 : index
    %c0_7 = arith.constant 0 : index
    %5 = vector.load %arg3[%c0_5, %c0_6, %c0_7] : memref<1x2x8xf32, #tpu.memory_space<vmem>>, vector<1x2x8xf32>
    %6 = vector.shape_cast %5 : vector<1x2x8xf32> to vector<2x8xf32>
    %7 = vector.shape_cast %6 : vector<2x8xf32> to vector<2x8x1xf32>
    %cst = arith.constant 0.000000e+00 : f32
    %8 = vector.broadcast %cst : f32 to vector<2x8x1xf32>
    %9 = arith.cmpf ogt, %7, %8 : vector<2x8x1xf32>
    %c0_8 = arith.constant 0 : index
    %c0_9 = arith.constant 0 : index
    %10 = vector.load %arg6[%c0_8, %c0_9] : memref<2x32xf32, #tpu.memory_space<vmem>>, vector<2x32xf32>
    %11 = vector.broadcast %7 : vector<2x8x1xf32> to vector<2x8x32xf32>
    %12 = arith.mulf %4, %11 : vector<2x8x32xf32>
    %cst_10 = arith.constant dense<0.000000e+00> : vector<2x32xf32>
    %13 = vector.multi_reduction <add>, %12, %cst_10 [1] : vector<2x8x32xf32> to vector<2x32xf32>
    %14 = arith.addf %10, %13 : vector<2x32xf32>
    %c0_11 = arith.constant 0 : index
    %c0_12 = arith.constant 0 : index
    %15 = vector.load %arg6[%c0_11, %c0_12] : memref<2x32xf32, #tpu.memory_space<vmem>>, vector<2x32xf32>
    tpu.vector_store %arg6[%c0_11, %c0_12], %14 {strides = array<i32>} : memref<2x32xf32, #tpu.memory_space<vmem>>, vector<2x32xf32>,
    %c0_13 = arith.constant 0 : index
    %c0_14 = arith.constant 0 : index
    %16 = vector.load %arg7[%c0_13, %c0_14] : memref<2x1xf32, #tpu.memory_space<vmem>>, vector<2x1xf32>
    %cst_15 = arith.constant dense<0.000000e+00> : vector<2xf32>
    %17 = vector.multi_reduction <add>, %6, %cst_15 [1] : vector<2x8xf32> to vector<2xf32>
    %18 = vector.shape_cast %17 : vector<2xf32> to vector<2x1xf32>
    %19 = arith.addf %16, %18 : vector<2x1xf32>
    %c0_16 = arith.constant 0 : index
    %c0_17 = arith.constant 0 : index
    %20 = vector.load %arg7[%c0_16, %c0_17] : memref<2x1xf32, #tpu.memory_space<vmem>>, vector<2x1xf32>
    tpu.vector_store %arg7[%c0_16, %c0_17], %19 {strides = array<i32>} : memref<2x1xf32, #tpu.memory_space<vmem>>, vector<2x1xf32>,
    %cst_18 = arith.constant -1.000000e+09 : f32
    %21 = vector.shape_cast %9 : vector<2x8x1xi1> to vector<2x8x1xi1>
    %22 = vector.broadcast %21 : vector<2x8x1xi1> to vector<2x8x32xi1>
    %23 = vector.broadcast %cst_18 : f32 to vector<2x8x32xf32>
    %24 = arith.select %22, %4, %23 : vector<2x8x32xi1>, vector<2x8x32xf32>
    %c0_19 = arith.constant 0 : index
    %c0_20 = arith.constant 0 : index
    %25 = vector.load %arg8[%c0_19, %c0_20] : memref<2x32xf32, #tpu.memory_space<vmem>>, vector<2x32xf32>
    %cst_21 = arith.constant dense<0xFF800000> : vector<2x32xf32>
    %26 = vector.multi_reduction <maximumf>, %24, %cst_21 [1] : vector<2x8x32xf32> to vector<2x32xf32>
    %27 = arith.maximumf %25, %26 : vector<2x32xf32>
    %c0_22 = arith.constant 0 : index
    %c0_23 = arith.constant 0 : index
    %28 = vector.load %arg8[%c0_22, %c0_23] : memref<2x32xf32, #tpu.memory_space<vmem>>, vector<2x32xf32>
    tpu.vector_store %arg8[%c0_22, %c0_23], %27 {strides = array<i32>} : memref<2x32xf32, #tpu.memory_space<vmem>>, vector<2x32xf32>,
    %29 = vector.shape_cast %4 : vector<2x8x32xf32> to vector<16x32xf32>
    %cst_24 = arith.constant dense<0.000000e+00> : vector<16x1xf32>
    %30 = tpu.matmul %29, %3, %cst_24 {dimension_numbers = #tpu.dot_dimension_numbers<[1], [1], [0], [0], [0, 0, 1, 0], [], []>} : vector<16x32xf32>, vector<1x32xf32>, vector<16x1xf32> -> vector<16x1xf32>
    %31 = vector.shape_cast %30 : vector<16x1xf32> to vector<2x8x1xf32>
    %cst_25 = arith.constant -1.000000e+09 : f32
    %32 = vector.broadcast %cst_25 : f32 to vector<2x8x1xf32>
    %33 = arith.select %9, %31, %32 : vector<2x8x1xi1>, vector<2x8x1xf32>
    %cst_26 = arith.constant dense<0xFF800000> : vector<2x1xf32>
    %34 = vector.multi_reduction <maximumf>, %33, %cst_26 [1] : vector<2x8x1xf32> to vector<2x1xf32>
    %c0_27 = arith.constant 0 : index
    %c0_28 = arith.constant 0 : index
    %35 = vector.load %arg9[%c0_27, %c0_28] : memref<2x1xf32, #tpu.memory_space<vmem>>, vector<2x1xf32>
    %36 = arith.maximumf %35, %34 : vector<2x1xf32>
    %c0_29 = arith.constant 0 : index
    %c0_30 = arith.constant 0 : index
    %37 = vector.load %arg9[%c0_29, %c0_30] : memref<2x1xf32, #tpu.memory_space<vmem>>, vector<2x1xf32>
    %38 = arith.subf %37, %36 : vector<2x1xf32>
    %39 = math.exp %38 : vector<2x1xf32>
    %40 = vector.shape_cast %36 : vector<2x1xf32> to vector<2x1x1xf32>
    %41 = vector.broadcast %40 : vector<2x1x1xf32> to vector<2x8x1xf32>
    %42 = arith.subf %33, %41 : vector<2x8x1xf32>
    %43 = math.exp %42 : vector<2x8x1xf32>
    %44 = arith.mulf %43, %7 : vector<2x8x1xf32>
    %c0_31 = arith.constant 0 : index
    %c0_32 = arith.constant 0 : index
    %45 = vector.load %arg10[%c0_31, %c0_32] : memref<2x1xf32, #tpu.memory_space<vmem>>, vector<2x1xf32>
    %46 = arith.mulf %39, %45 : vector<2x1xf32>
    %cst_33 = arith.constant dense<0.000000e+00> : vector<2x1xf32>
    %47 = vector.multi_reduction <add>, %44, %cst_33 [1] : vector<2x8x1xf32> to vector<2x1xf32>
    %48 = arith.addf %46, %47 : vector<2x1xf32>
    %c0_34 = arith.constant 0 : index
    %c0_35 = arith.constant 0 : index
    %49 = vector.load %arg10[%c0_34, %c0_35] : memref<2x1xf32, #tpu.memory_space<vmem>>, vector<2x1xf32>
    tpu.vector_store %arg10[%c0_34, %c0_35], %48 {strides = array<i32>} : memref<2x1xf32, #tpu.memory_space<vmem>>, vector<2x1xf32>,
    %c0_36 = arith.constant 0 : index
    %c0_37 = arith.constant 0 : index
    %50 = vector.load %arg11[%c0_36, %c0_37] : memref<2x32xf32, #tpu.memory_space<vmem>>, vector<2x32xf32>
    %51 = vector.broadcast %39 : vector<2x1xf32> to vector<2x32xf32>
    %52 = arith.mulf %51, %50 : vector<2x32xf32>
    %53 = vector.broadcast %44 : vector<2x8x1xf32> to vector<2x8x32xf32>
    %54 = arith.mulf %53, %4 : vector<2x8x32xf32>
    %cst_38 = arith.constant dense<0.000000e+00> : vector<2x32xf32>
    %55 = vector.multi_reduction <add>, %54, %cst_38 [1] : vector<2x8x32xf32> to vector<2x32xf32>
    %56 = arith.addf %52, %55 : vector<2x32xf32>
    %c0_39 = arith.constant 0 : index
    %c0_40 = arith.constant 0 : index
    %57 = vector.load %arg11[%c0_39, %c0_40] : memref<2x32xf32, #tpu.memory_space<vmem>>, vector<2x32xf32>
    tpu.vector_store %arg11[%c0_39, %c0_40], %56 {strides = array<i32>} : memref<2x32xf32, #tpu.memory_space<vmem>>, vector<2x32xf32>,
    %c0_41 = arith.constant 0 : index
    %c0_42 = arith.constant 0 : index
    %58 = vector.load %arg9[%c0_41, %c0_42] : memref<2x1xf32, #tpu.memory_space<vmem>>, vector<2x1xf32>
    tpu.vector_store %arg9[%c0_41, %c0_42], %36 {strides = array<i32>} : memref<2x1xf32, #tpu.memory_space<vmem>>, vector<2x1xf32>,
    %c0_i32_43 = arith.constant 0 : i32
    %59 = arith.cmpi eq, %arg1, %c0_i32_43 : i32
    %60 = arith.extui %59 : i1 to i32
    %c0_i32_44 = arith.constant 0 : i32
    %61 = arith.cmpi ne, %60, %c0_i32_44 : i32
    scf.if %61 {
      %c0_45 = arith.constant 0 : index
      %c0_46 = arith.constant 0 : index
      %62 = vector.load %arg6[%c0_45, %c0_46] : memref<2x32xf32, #tpu.memory_space<vmem>>, vector<2x32xf32>
      %c0_47 = arith.constant 0 : index
      %c0_48 = arith.constant 0 : index
      %63 = vector.load %arg7[%c0_47, %c0_48] : memref<2x1xf32, #tpu.memory_space<vmem>>, vector<2x1xf32>
      %cst_49 = arith.constant 9.99999971E-10 : f32
      %64 = vector.broadcast %cst_49 : f32 to vector<2x1xf32>
      %65 = arith.maximumf %63, %64 : vector<2x1xf32>
      %66 = vector.broadcast %65 : vector<2x1xf32> to vector<2x32xf32>
      %67 = arith.divf %62, %66 : vector<2x32xf32>
      %c0_50 = arith.constant 0 : index
      %c0_51 = arith.constant 0 : index
      %68 = vector.load %arg11[%c0_50, %c0_51] : memref<2x32xf32, #tpu.memory_space<vmem>>, vector<2x32xf32>
      %c0_52 = arith.constant 0 : index
      %c0_53 = arith.constant 0 : index
      %69 = vector.load %arg10[%c0_52, %c0_53] : memref<2x1xf32, #tpu.memory_space<vmem>>, vector<2x1xf32>
      %cst_54 = arith.constant 9.99999971E-10 : f32
      %70 = vector.broadcast %cst_54 : f32 to vector<2x1xf32>
      %71 = arith.maximumf %69, %70 : vector<2x1xf32>
      %72 = vector.broadcast %71 : vector<2x1xf32> to vector<2x32xf32>
      %73 = arith.divf %68, %72 : vector<2x32xf32>
      %c0_55 = arith.constant 0 : index
      %c0_56 = arith.constant 0 : index
      %74 = vector.load %arg5[%c0_55, %c0_56] : memref<2x96xf32, #tpu.memory_space<vmem>>, vector<2x32xf32>
      tpu.vector_store %arg5[%c0_55, %c0_56], %67 {strides = array<i32>} : memref<2x96xf32, #tpu.memory_space<vmem>>, vector<2x32xf32>,
      %c0_57 = arith.constant 0 : index
      %c0_58 = arith.constant 0 : index
      %75 = vector.load %arg8[%c0_57, %c0_58] : memref<2x32xf32, #tpu.memory_space<vmem>>, vector<2x32xf32>
      %c0_59 = arith.constant 0 : index
      %c32 = arith.constant 32 : index
      %76 = vector.load %arg5[%c0_59, %c32] : memref<2x96xf32, #tpu.memory_space<vmem>>, vector<2x32xf32>
      tpu.vector_store %arg5[%c0_59, %c32], %75 {strides = array<i32>} : memref<2x96xf32, #tpu.memory_space<vmem>>, vector<2x32xf32>,
      %c0_60 = arith.constant 0 : index
      %c64 = arith.constant 64 : index
      %77 = vector.load %arg5[%c0_60, %c64] : memref<2x96xf32, #tpu.memory_space<vmem>>, vector<2x32xf32>
      tpu.vector_store %arg5[%c0_60, %c64], %73 {strides = array<i32>} : memref<2x96xf32, #tpu.memory_space<vmem>>, vector<2x32xf32>,
    } else {
    }
    return
  }
  func.func @transform_0(%arg0: i32, %arg1: i32) -> (i32, i32, i32) {
    %c0_i32 = arith.constant 0 : i32
    %c0_i32_0 = arith.constant 0 : i32
    return %arg0, %arg1, %c0_i32 : i32, i32, i32
  }
  func.func @transform_1(%arg0: i32, %arg1: i32) -> (i32, i32, i32) {
    %c0_i32 = arith.constant 0 : i32
    %c0_i32_0 = arith.constant 0 : i32
    return %arg1, %arg0, %c0_i32 : i32, i32, i32
  }
  func.func @transform_2(%arg0: i32, %arg1: i32) -> (i32, i32) {
    %c0_i32 = arith.constant 0 : i32
    %c0_i32_0 = arith.constant 0 : i32
    %c0_i32_1 = arith.constant 0 : i32
    return %c0_i32, %c0_i32_0 : i32, i32
  }
  func.func @transform_3(%arg0: i32, %arg1: i32) -> (i32, i32) {
    %c0_i32 = arith.constant 0 : i32
    %c0_i32_0 = arith.constant 0 : i32
    return %arg0, %c0_i32 : i32, i32
  }
}

</mosaic_0001>

<bundles_post_ra>
// kernel: tpu_custom_call.1
= control target key start
LH: loop header
LB: loop body
LE: loop exit
PB: predicated region body
PF: predicated region fallthrough
CT: control target
= control target key end

     0   :  { %8 = vsyncpa [#allocation9], 0  ;;  %s527_s0 = inlined_call_operand.hbm [shape: f32[2,8,32], index: 0, kind: input, shape index: {}]   ;;  %s528_s1 = inlined_call_operand.hbm [shape: f32[1,2,8], index: 1, kind: input, shape index: {}]   ;;  %s529_s2 = inlined_call_operand.vmem [shape: f32[1,32], index: 2, kind: input, shape index: {}]   ;;  %s530_s3 = inlined_call_operand.hbm [shape: f32[2,96], index: 3, kind: output, shape index: {}]  }
   0x1   :  { %9 = vsyncpa [#allocation12], 0 }
   0x2   :  { %10 = vsyncpa [#allocation10], 0  ;;  %s418_s12 = smov [#allocation8]  }
   0x3   :  { %s16_s13 = sshll.u32 %s418_s12, 4  ;;  %s17_s13 = int_to_ptr.vmem [resolvable:$true] %s16_s13 }
   0x4   :  { %s360_s14 = scalar_lea.vmem %s17_s13, 256  ;;  %p365_p1 = scmp.lt.s32.totalorder %s17_s13, %s17_s13 }
   0x5   :  { %p361_p0 = scmp.ne.s32.totalorder %s17_s13, %s360_s14  ;;  %p366_p2 = scmp.lt.s32.totalorder %s360_s14, %s360_s14 }
   0x7   :  { %p367_p3 = por %p366_p2, %p365_p1 }
   0x9   :  { %p368_p4 = pnand %p367_p3, %p361_p0 }
   0xb   :  { %371 = shalt.err (!%p368_p4)
}
   0xc   :  { %s419_s15 = smov 128   ;;  %s420_s16 = smov 8  }
   0xd   :  { %22 = dma.hbm_to_vmem [thread:$0]  %s527_s0, 256, %s17_s13, [#allocation9], %s419_s15, %s419_s15, %s420_s16  }
   0xe   :  { %s421_s19 = smov [#allocation11]  }
   0xf   :  { %s29_s20 = sshll.u32 %s421_s19, 4  ;;  %s30_s20 = int_to_ptr.vmem [resolvable:$true] %s29_s20 }
  0x10   :  { %s380_s21 = scalar_lea.vmem %s30_s20, 32  ;;  %p385_p6 = scmp.lt.s32.totalorder %s30_s20, %s30_s20 }
  0x11   :  { %p381_p5 = scmp.ne.s32.totalorder %s30_s20, %s380_s21  ;;  %p386_p7 = scmp.lt.s32.totalorder %s380_s21, %s380_s21 }
  0x13   :  { %p387_p8 = por %p386_p7, %p385_p6 }
  0x15   :  { %p388_p9 = pnand %p387_p8, %p381_p5 }
  0x17   :  { %391 = shalt.err (!%p388_p9)
}
  0x18   :  { %32 = dma.hbm_to_vmem [thread:$0]  %s528_s1, 32, %s30_s20, [#allocation12]  }
  0x19   :  { %412 = dma.done.wait [#allocation9], 256  }
  0x1a   :  { %413 = vsyncadd [#allocation9], 4294967040 }
  0x1b   :  { %414 = dma.done.wait [#allocation12], 32  }
  0x1c   :  { %415 = vsyncadd [#allocation12], 4294967264  ;;  %v57_v0 = vlaneseq  ;;  %v328_v3 = vld [vmem:[%s529_s2] ss:$0 sm:$0xff]  ;;  %v463_v4 = vld [vmem:[#allocation8] sm:$0xff]  ;;  %vm76_vm0 = vcmask 261120  }
  0x1d   :  { %v465_v5 = vld [vmem:[#allocation8 + $0x8] sm:$0xff]  ;;  %v140_v7 = vmul.f32 %v328_v3, %v463_v4  ;;  %v56_v9 = vld [vmem:[#allocation11] sm:$0x3]  ;;  %vm45_vm1 = vcmask 254976   ;;  %v422_v14 = vmov 0.0   ;;  %vm100_vm2 = vcmask 58368  }
  0x1e   :  { %v455_v1 = vshrl.u32 %v57_v0, 7  ;;  %v141_v8 = vmul.f32 %v328_v3, %v465_v5  ;;  %46 = vst.msk [vmem:[#allocation2] sm:$0x3] %vm45_vm1, %v422_v14  ;;  %52 = vst.msk [vmem:[#allocation7] sm:$0x3] %vm45_vm1, %v422_v14  ;;  %v101_v15 = vsel %vm100_vm2, %v56_v9, 0.0 }
  0x1f   :  { %v142_v11 = vsel %vm76_vm0, %v140_v7, 0.0  ;;  %v423_v16 = vmov -1e+09   ;;  %vm47_vm3 = vcmask 1024   ;;  %v424_v17 = vmov 0   ;;  %s426_s1 = smov 32  }
  0x20   :  { %v458_v2 = vsub.s32 0, %v455_v1  ;;  %v66_v6 = vsub.s32 1, %v455_v1  ;;  %143 = vadd.xlane.f32.xlu0 %v142_v11  ;;  %v145_v13 = vsel %vm76_vm0, %v141_v8, 0.0  ;;  %49 = vst.msk [vmem:[#allocation4] sm:$0x3] %vm45_vm1, %v423_v16  ;;  %340 = vset.pattern.permute.xlu1 %v424_v17  ;;  %vm93_vm6 = vcmask 1041409  }
  0x21   :  { %50 = vst.msk [vmem:[#allocation5] sm:$0x3] %vm47_vm3, %v423_v16  ;;  %48 = vst.msk [vmem:[#allocation3] sm:$0x3] %vm47_vm3, %v422_v14  ;;  %341 = vset.pattern.permute.xlu0 %v424_v17  ;;  %vm214_vm7 = vcmask 7168   ;;  %s427_s2 = smov 64  }
  0x22   :  { %v60_v10 = vrot.slane %v56_v9, %v458_v2  ;;  %v67_v12 = vrot.slane %v56_v9, %v66_v6  ;;  %51 = vst.msk [vmem:[#allocation6] sm:$0x3] %vm47_vm3, %v422_v14  ;;  %vm304_vm8 = vcmask 517376   ;;  %s428_s25 = smov [#allocation13]   ;;  %vm310_vm9 = vcmask 779776  }
  0x23   :  { %s318_s26 = sshll.u32 %s428_s25, 4  ;;  %s319_s26 = int_to_ptr.vmem [resolvable:$true] %s318_s26 }
  0x24   :  { %62 = vbcast.lane.b32.xlu1 %v60_v10, 256  ;;  %146 = vadd.xlane.f32.xlu0 %v145_v13  ;;  %v425_v10 = vmov 1966171168   ;;  %s392_s27 = scalar_lea.vmem %s319_s26, 32  ;;  %p397_p11 = scmp.lt.s32.totalorder %s319_s26, %s319_s26 }
  0x25   :  { %v73_v50 = vld [vmem:[#allocation2] sm:$0x3]  ;;  %v173_v11 = vunpack.c.l.s4 %v425_v10  ;;  %p393_p10 = scmp.ne.s32.totalorder %s319_s26, %s392_s27  ;;  %p398_p12 = scmp.lt.s32.totalorder %s392_s27, %s392_s27 }
  0x27   :  { %v113_v53 = vld [vmem:[#allocation4] sm:$0x3]  ;;  %v174_v16 = vunpack.c.0.s8 %v173_v11  ;;  %p399_p13 = por %p398_p12, %p397_p11 }
  0x28   :  { %69 = vbcast.lane.b32.xlu1 %v67_v12, 256  ;;  %102 = vadd.xlane.f32.xlu0 %v101_v15  ;;  %v99_v6 = vld [vmem:[#allocation3] sm:$0x3] }
  0x29   :  { %p400_p0 = pnand %p399_p13, %p393_p10 }
  0x96   :  { %v479_v18 = vpop.permute.xlu1 %62 }
  0x97   :  { %v74_v19 = vmul.f32 %v479_v18, %v463_v4  ;;  %vm71_vm4 = vcmp.gt.f32.partialorder %v479_v18, 0.0 }
  0x98   :  { %v111_v20 = vsel %vm71_vm4, %v463_v4, -1e+09 }
  0x99   :  { %v77_v21 = vsel %vm76_vm0, %v74_v19, 0.0  ;;  %v114_v22 = vsel %vm76_vm0, %v111_v20, -inf }
  0x9a   :  { %v78_v23 = vrot.slane %v77_v21, 4  ;;  %v489_v24 = vpop.permute.xlu1 %69  ;;  %v115_v25 = vrot.slane %v114_v22, 4 }
  0x9b   :  { %v75_v26 = vmul.f32 %v489_v24, %v465_v5  ;;  %vm72_vm5 = vcmp.gt.f32.partialorder %v489_v24, 0.0 }
  0x9c   :  { %v79_v27 = vadd.f32 %v78_v23, %v77_v21  ;;  %v116_v28 = vmax.f32 %v114_v22, %v115_v25  ;;  %v112_v29 = vsel %vm72_vm5, %v465_v5, -1e+09  ;;  %v162_v21 = vld [vmem:[#allocation5] sm:$0x3]  ;;  %v177_v22 = vsub.s32 %v174_v16, %v455_v1 }
  0x9d   :  { %v84_v30 = vsel %vm76_vm0, %v75_v26, 0.0  ;;  %v121_v31 = vsel %vm76_vm0, %v112_v29, -inf }
  0x9e   :  { %v80_v32 = vrot.slane %v79_v27, 2  ;;  %v85_v33 = vrot.slane %v84_v30, 4  ;;  %v117_v34 = vrot.slane %v116_v28, 2  ;;  %v122_v35 = vrot.slane %v121_v31, 4 }
  0xa0   :  { %v81_v36 = vadd.f32 %v80_v32, %v79_v27  ;;  %v86_v37 = vadd.f32 %v85_v33, %v84_v30  ;;  %v118_v38 = vmax.f32 %v116_v28, %v117_v34  ;;  %v123_v39 = vmax.f32 %v121_v31, %v122_v35 }
  0xa2   :  { %v82_v40 = vrot.slane %v81_v36, 1  ;;  %v87_v41 = vrot.slane %v86_v37, 2  ;;  %v119_v42 = vrot.slane %v118_v38, 1  ;;  %v124_v43 = vrot.slane %v123_v39, 2 }
  0xa4   :  { %v88_v44 = vadd.f32 %v87_v41, %v86_v37  ;;  %v125_v45 = vmax.f32 %v123_v39, %v124_v43  ;;  %v83_v46 = vadd.f32 %v82_v40, %v81_v36  ;;  %v120_v48 = vmax.f32 %v118_v38, %v119_v42 }
  0xa6   :  { %v89_v47 = vrot.slane %v88_v44, 1  ;;  %v126_v49 = vrot.slane %v125_v45, 1 }
  0xa8   :  { %v90_v51 = vadd.f32 %v89_v47, %v88_v44  ;;  %v127_v52 = vmax.f32 %v125_v45, %v126_v49 }
  0xa9   :  { %v144_v58 = vpop.xlane.xlu0 %143 }
  0xaa   :  { %v94_v54 = vsel %vm93_vm6, %v90_v51, %v83_v46  ;;  %v130_v55 = vsel %vm93_vm6, %v127_v52, %v120_v48  ;;  %v148_v59 = vsel %vm71_vm4, %v144_v58, -1e+09  ;;  %v212_v52 = vld [vmem:[#allocation6] sm:$0x3] }
  0xab   :  { %v96_v56 = vadd.f32 %v94_v54, %v73_v50  ;;  %v132_v57 = vmax.f32 %v113_v53, %v130_v55  ;;  %v150_v60 = vrot.slane %v148_v59, 4 }
  0xad   :  { %98 = vst.msk [vmem:[#allocation2] sm:$0x3] %vm45_vm1, %v96_v56  ;;  %133 = vst.msk [vmem:[#allocation4] sm:$0x3] %vm45_vm1, %v132_v57  ;;  %v151_v61 = vmax.f32 %v148_v59, %v150_v60  ;;  %v147_v62 = vpop.xlane.xlu0 %146 }
  0xae   :  { %v149_v63 = vsel %vm72_vm5, %v147_v62, -1e+09 }
  0xaf   :  { %v152_v0 = vrot.slane %v151_v61, 2  ;;  %v156_v3 = vrot.slane %v149_v63, 4 }
  0xb1   :  { %v153_v7 = vmax.f32 %v151_v61, %v152_v0  ;;  %v157_v8 = vmax.f32 %v149_v63, %v156_v3  ;;  %v103_v9 = vpop.xlane.xlu0 %102 }
  0xb2   :  { %v104_v12 = vadd.f32 %v103_v9, %v99_v6 }
  0xb3   :  { %v158_v13 = vrot.slane %v157_v8, 2  ;;  %v154_v14 = vrot.slane %v153_v7, 1 }
  0xb4   :  { %106 = vst.msk [vmem:[#allocation3] sm:$0x3] %vm47_vm3, %v104_v12  ;;  %v299_v61 = vld [vmem:[#allocation4] sm:$0x3] }
  0xb5   :  { %v159_v15 = vmax.f32 %v157_v8, %v158_v13  ;;  %v155_v19 = vmax.f32 %v153_v7, %v154_v14 }
  0xb7   :  { %v160_v17 = vrot.slane %v159_v15, 1 }
  0xb9   :  { %v161_v20 = vmax.f32 %v159_v15, %v160_v17 }
  0xbb   :  { %v165_v23 = vsel %vm93_vm6, %v161_v20, %v155_v19 }
  0xbc   :  { %v167_v25 = vmax.f32 %v162_v21, %v165_v23 }
  0xbe   :  { %v178_v26 = vrot.slane %v167_v25, %v177_v22  ;;  %274 = vst.msk [vmem:[#allocation5] sm:$0x3] %vm47_vm3, %v167_v25  ;;  %v168_v1 = vsub.f32 %v162_v21, %v167_v25  ;;  %v235_v21 = vld [vmem:[#allocation7] sm:$0x3] }
  0xc0   :  { %v179_v27 = vcombine.high %v178_v26, %v178_v26  ;;  %v186_v28 = vrot.slane %v178_v26, %v177_v22  ;;  %v169_v36 = vmul.f32 1.442695, %v168_v1 }
  0xc2   :  { %v193_v29 = vrot.slane %v179_v27, %v177_v22  ;;  %v197_v30 = vrot.slane %v186_v28, %v458_v2 }
  0xc4   :  { %v201_v31 = vrot.slane %v193_v29, %v458_v2  ;;  %v204_v32 = vsub.f32 %v148_v59, %v197_v30  ;;  %v279_v59 = vld [vmem:[#allocation3] sm:$0x3] }
  0xc5   :  { %v280_v60 = vmax.f32 %v279_v59, 1e-09 }
  0xc6   :  { %v205_v33 = vsub.f32 %v149_v63, %v201_v31  ;;  %v206_v34 = vmul.f32 1.442695, %v204_v32  ;;  %v278_v31 = vld [vmem:[#allocation2] sm:$0x3] }
  0xc8   :  { %342 = vpow2.f32 %v206_v34  ;;  %v208_v35 = vmul.f32 1.442695, %v205_v33 }
  0xca   :  { %344 = vpow2.f32 %v208_v35 }
  0xcb   :  { %346 = vpow2.f32 %v169_v36 }
  0xd5   :  { %v343_v37 = vpop.eup %342 }
  0xd6   :  { %v210_v38 = vmul.f32 %v343_v37, %v479_v18 }
  0xd7   :  { %v345_v39 = vpop.eup %344 }
  0xd8   :  { %244 = vperm.xlu1 %340, %v210_v38   ;;  %v215_v40 = vsel %vm214_vm7, %v210_v38, 0.0  ;;  %v211_v41 = vmul.f32 %v345_v39, %v489_v24  ;;  %v347_v51 = vpop.eup %346 }
  0xd9   :  { %v216_v42 = vrot.slane %v215_v40, 4  ;;  %v213_v55 = vmul.f32 %v347_v51, %v212_v52 }
  0xda   :  { %249 = vperm.xlu0 %341, %v211_v41   ;;  %v222_v2 = vsel %vm214_vm7, %v211_v41, 0.0 }
  0xdb   :  { %v217_v43 = vadd.f32 %v216_v42, %v215_v40  ;;  %v223_v44 = vrot.slane %v222_v2, 4 }
  0xdd   :  { %v218_v45 = vrot.slane %v217_v43, 2  ;;  %v224_v46 = vadd.f32 %v223_v44, %v222_v2 }
  0xdf   :  { %v219_v47 = vadd.f32 %v218_v45, %v217_v43  ;;  %v225_v48 = vrot.slane %v224_v46, 2 }
  0xe1   :  { %v220_v49 = vrot.slane %v219_v47, 1  ;;  %v226_v50 = vadd.f32 %v225_v48, %v224_v46 }
  0xe3   :  { %v227_v53 = vrot.slane %v226_v50, 1  ;;  %v221_v18 = vadd.f32 %v220_v49, %v219_v47 }
  0xe5   :  { %v228_v54 = vadd.f32 %v227_v53, %v226_v50 }
  0xe7   :  { %v231_v56 = vsel %vm93_vm6, %v228_v54, %v221_v18 }
  0xe8   :  { %v233_v24 = vadd.f32 %v231_v56, %v213_v55 }
  0xea   :  { %234 = vst.msk [vmem:[#allocation6] sm:$0x3] %vm47_vm3, %v233_v24 }
  0xf1   :  { %v289_v57 = vld [vmem:[#allocation6] sm:$0x3] }
  0xf2   :  { %v290_v58 = vmax.f32 %v289_v57, 1e-09 }
  0xf4   :  { %293 = vperm.xlu1 %340, %v290_v58  }
  0xf8   :  { %238 = vperm.xlu1 %340, %v347_v51  }
  0xfc   :  { %283 = vperm.xlu1 %340, %v280_v60  }
 0x100   :  { %301 = vrot.lane.b32.xlu1 %v299_v61, %s426_s1 }
 0x153   :  { %v245_v62 = vpop.permute.xlu1 %244 }
 0x154   :  { %v252_v3 = vmul.f32 %v245_v62, %v463_v4 }
 0x155   :  { %v250_v63 = vpop.permute.xlu0 %249 }
 0x156   :  { %v253_v0 = vmul.f32 %v250_v63, %v465_v5  ;;  %v254_v7 = vsel %vm76_vm0, %v252_v3, 0.0 }
 0x157   :  { %v255_v9 = vrot.slane %v254_v7, 4 }
 0x158   :  { %v261_v6 = vsel %vm76_vm0, %v253_v0, 0.0 }
 0x159   :  { %v262_v8 = vrot.slane %v261_v6, 4  ;;  %v256_v11 = vadd.f32 %v255_v9, %v254_v7 }
 0x15b   :  { %v263_v10 = vadd.f32 %v262_v8, %v261_v6  ;;  %v257_v13 = vrot.slane %v256_v11, 2 }
 0x15d   :  { %v264_v12 = vrot.slane %v263_v10, 2  ;;  %v258_v15 = vadd.f32 %v257_v13, %v256_v11 }
 0x15f   :  { %v265_v14 = vadd.f32 %v264_v12, %v263_v10  ;;  %v259_v17 = vrot.slane %v258_v15, 1 }
 0x161   :  { %v266_v16 = vrot.slane %v265_v14, 1  ;;  %v260_v5 = vadd.f32 %v259_v17, %v258_v15 }
 0x163   :  { %v267_v20 = vadd.f32 %v266_v16, %v265_v14 }
 0x165   :  { %v270_v23 = vsel %vm93_vm6, %v267_v20, %v260_v5 }
 0x16f   :  { %v294_v19 = vpop.permute.xlu1 %293 }
 0x170   :  { %348 = vrcp.f32 %v294_v19 }
 0x173   :  { %v239_v4 = vpop.permute.xlu1 %238 }
 0x174   :  { %v241_v22 = vmul.f32 %v239_v4, %v235_v21 }
 0x176   :  { %v272_v25 = vadd.f32 %v270_v23, %v241_v22 }
 0x177   :  { %v284_v26 = vpop.permute.xlu1 %283 }
 0x178   :  { %273 = vst.msk [vmem:[#allocation7] sm:$0x3] %vm45_vm1, %v272_v25  ;;  %350 = vrcp.f32 %v284_v26 }
 0x17b   :  { %v302_v33 = vpop.permute.xlu1 %301 }
 0x17d   :  { %v349_v27 = vpop.eup %348 }
 0x17f   :  { %v288_v28 = vld [vmem:[#allocation7] sm:$0x3] }
 0x180   :  { %v297_v29 = vmul.f32 %v349_v27, %v288_v28 }
 0x182   :  { %307 = vrot.lane.b32.xlu1 %v297_v29, %s427_s2 }
 0x185   :  { %v351_v30 = vpop.eup %350 }
 0x186   :  { %v287_v32 = vmul.f32 %v351_v30, %v278_v31 }
 0x188   :  { %298 = vst.msk [vmem:[#allocation13] sm:$0x3] %vm45_vm1, %v287_v32 }
 0x189   :  { %305 = vst.msk [vmem:[#allocation13] sm:$0x3] %vm304_vm8, %v302_v33 }
 0x1f4   :  { %v308_v34 = vpop.permute.xlu1 %307 }
 0x1f5   :  { %311 = vst.msk [vmem:[#allocation13] sm:$0x3] %vm310_vm9, %v308_v34 }
 0x1f6   :  { %403 = shalt.err (!%p400_p0)
}
 0x1f7   :  { %321 = dma.vmem_to_hbm [thread:$0]  %s319_s26, 32, %s530_s3, [#allocation10]  }
 0x1f8   :  { %416 = dma.done.wait [#allocation10], 32  }
 0x1f9   :  { %417 = vsyncadd [#allocation10], 4294967264 }
 0x1fa   :  { %325 = vsyncpa [#allocation9], 1 }
 0x1fb   :  { %326 = vsyncpa [#allocation12], 1 }
 0x1fc   :  { %327 = vsyncpa [#allocation10], 1 }

</bundles_post_ra>
